<compile_context>
chip_gen: v7x
topology: tpu7x:2x2x1
jax: 0.10.0
libtpu: 0.0.40
codegen_flags: <defaults>
</compile_context>

<pallas_src>
import math

import jax
import jax.numpy as jnp
from jax import lax
from jax.experimental import pallas as pl
from jax.experimental.pallas import tpu as pltpu

EPS = 1e-5
_VMEM_LIMIT = 32 * 1024 * 1024  # explicit scoped-VMEM budget (safe on v5e/v6e/v7x)


def _pick_tile(n, target):
    """Largest divisor of n that is <= target (shapes here divide cleanly)."""
    t = min(n, target)
    while n % t != 0:
        t -= 1
    return t


def _quantize(w):
    """Forward value of BitLinear.quantize_weight(): ternary weight + scale."""
    scale = jnp.abs(w).mean() + EPS
    wq = jnp.clip(jnp.round(w / scale), -1.0, 1.0)
    return wq, scale


# ----------------------------------------------------------------------------
# Fused QKV BitLinear projection (+ RoPE folded into the finalize step).
#   x2d:      (M, H)         M = batch*seq
#   w_heads:  (3*NH, H, D)   ternary weights, one (H, D) slab per output head
#   out:      (3*NH, M, D)   heads 0..NH-1 = q, NH..2NH-1 = k, 2NH..3NH-1 = v
# Grid: (M/TM, 3*NH, H/TK) with the K reduction last; per-head output tiles
# keep the lane dim = D (full array dim) so the layout is always legal.
# ----------------------------------------------------------------------------
def _qkv_projection(x2d, w_heads, scales, flags, sin_m, cos_m, compute_dtype):
    M, H = x2d.shape
    n_out, H2, D = w_heads.shape
    assert H2 == H
    TM = _pick_tile(M, 256)
    TK = _pick_tile(H, 512)
    grid = (M // TM, n_out, H // TK)
    use_roll = (D % 128 == 0)  # XLU roll for realistic head dims; concat otherwise

    def kernel(scale_ref, flag_ref, x_ref, w_ref, sin_ref, cos_ref, o_ref, acc_ref):
        kk = pl.program_id(2)
        j = pl.program_id(1)

        @pl.when(kk == 0)
        def _():
            acc_ref[...] = jnp.zeros_like(acc_ref)

        acc_ref[...] += jnp.dot(
            x_ref[...].astype(compute_dtype),
            w_ref[...],
            preferred_element_type=jnp.float32,
        )

        last = kk == pl.num_programs(2) - 1
        needs_rope = flag_ref[j] != 0  # q/k heads get rotary, v heads do not

        @pl.when(jnp.logical_and(last, jnp.logical_not(needs_rope)))
        def _():
            o_ref[...] = (acc_ref[...] * scale_ref[j]).astype(o_ref.dtype)

        @pl.when(jnp.logical_and(last, needs_rope))
        def _():
            out = acc_ref[...] * scale_ref[j]
            # rotate_half folded as: sign already merged into sin table, so we
            # only need a half rotation of the lanes.
            if use_roll:
                rot = pltpu.roll(out, shift=D // 2, axis=-1)
            else:
                rot = jnp.concatenate((out[:, D // 2:], out[:, : D // 2]), axis=-1)
            o_ref[...] = (out * cos_ref[...] + rot * sin_ref[...]).astype(o_ref.dtype)

    return pl.pallas_call(
        kernel,
        out_shape=jax.ShapeDtypeStruct((n_out, M, D), jnp.float32),
        grid=grid,
        in_specs=[
            pl.BlockSpec(memory_space=pltpu.MemorySpace.SMEM),        # per-head scales
            pl.BlockSpec(memory_space=pltpu.MemorySpace.SMEM),        # rope flags
            pl.BlockSpec((TM, TK), lambda i, j, k: (i, k)),           # activations
            pl.BlockSpec((None, TK, D), lambda i, j, k: (j, k, 0)),   # head weight slab
            pl.BlockSpec((TM, D), lambda i, j, k: (i, 0)),            # signed sin
            pl.BlockSpec((TM, D), lambda i, j, k: (i, 0)),            # cos
        ],
        out_specs=pl.BlockSpec((None, TM, D), lambda i, j, k: (j, i, 0)),
        scratch_shapes=[pltpu.VMEM((TM, D), jnp.float32)],
        compiler_params=pltpu.CompilerParams(
            dimension_semantics=("parallel", "parallel", "arbitrary"),
            vmem_limit_bytes=_VMEM_LIMIT,
        ),
    )(scales, flags, x2d, w_heads, sin_m, cos_m)


# ----------------------------------------------------------------------------
# Flash-style causal attention over the head-major qkv tensor (3*NH, M, D).
# Grid: (B, NH, S/TQ, S/TKV), KV axis innermost/"arbitrary"; running m/l/acc in
# VMEM scratch; fully-masked KV tiles above the diagonal are skipped.
# ----------------------------------------------------------------------------
def _flash_attention(qkv, B, S, NH, D, compute_dtype):
    M = B * S
    TQ = _pick_tile(S, 256)
    TKV = TQ  # equal tiles keep every computed block's rows non-empty (no NaNs)
    NQ = S // TQ
    NKV = S // TKV
    sm_scale = 1.0 / math.sqrt(D)
    approx = compute_dtype != jnp.float32
    grid = (B, NH, NQ, NKV)

    def kernel(q_ref, k_ref, v_ref, o_ref, m_sc, l_sc, acc_sc):
        qi = pl.program_id(2)
        ki = pl.program_id(3)

        @pl.when(ki == 0)
        def _():
            m_sc[...] = jnp.full_like(m_sc, -jnp.inf)
            l_sc[...] = jnp.zeros_like(l_sc)
            acc_sc[...] = jnp.zeros_like(acc_sc)

        @pl.when(ki <= qi)  # causal block-skip (KV tiles fully above diag do nothing)
        def _():
            q = q_ref[...].astype(compute_dtype)
            k = k_ref[...].astype(compute_dtype)
            # contract on the last axis of both -> no k.T materialization
            s = lax.dot_general(q, k, (((1,), (1,)), ((), ())),
                                preferred_element_type=jnp.float32) * sm_scale
            row = lax.broadcasted_iota(jnp.int32, (TQ, TKV), 0) + qi * TQ
            col = lax.broadcasted_iota(jnp.int32, (TQ, TKV), 1) + ki * TKV
            s = jnp.where(row >= col, s, -jnp.inf)
            m_prev = m_sc[...]
            m_new = jnp.maximum(m_prev, jnp.max(s, axis=-1, keepdims=True))
            alpha = jnp.exp(m_prev - m_new)
            p = jnp.exp(s - m_new)
            l_sc[...] = alpha * l_sc[...] + jnp.sum(p, axis=-1, keepdims=True)
            acc_sc[...] = alpha * acc_sc[...] + jnp.dot(
                p.astype(compute_dtype), v_ref[...].astype(compute_dtype),
                preferred_element_type=jnp.float32)
            m_sc[...] = m_new

        @pl.when(ki == pl.num_programs(3) - 1)
        def _():
            inv = pl.reciprocal(l_sc[...], approx=approx)
            o_ref[...] = (acc_sc[...] * inv).astype(o_ref.dtype)

    q_spec = pl.BlockSpec((None, TQ, D), lambda b, h, qi, ki: (h, b * NQ + qi, 0))
    k_spec = pl.BlockSpec((None, TKV, D), lambda b, h, qi, ki: (NH + h, b * NKV + ki, 0))
    v_spec = pl.BlockSpec((None, TKV, D),
                          lambda b, h, qi, ki: (2 * NH + h, b * NKV + ki, 0))
    o_spec = pl.BlockSpec((None, TQ, D), lambda b, h, qi, ki: (h, b * NQ + qi, 0))

    return pl.pallas_call(
        kernel,
        out_shape=jax.ShapeDtypeStruct((NH, M, D), jnp.float32),
        grid=grid,
        in_specs=[q_spec, k_spec, v_spec],
        out_specs=o_spec,
        scratch_shapes=[
            pltpu.VMEM((TQ, 1), jnp.float32),   # running max
            pltpu.VMEM((TQ, 1), jnp.float32),   # running denom
            pltpu.VMEM((TQ, D), jnp.float32),   # output accumulator
        ],
        compiler_params=pltpu.CompilerParams(
            dimension_semantics=("parallel", "parallel", "parallel", "arbitrary"),
            vmem_limit_bytes=_VMEM_LIMIT,
        ),
    )(qkv, qkv, qkv)


# ----------------------------------------------------------------------------
# Output BitLinear projection, reading y head-major (NH, M, D) so the
# head-merge "transpose" happens for free through the K-reduction index_map.
#   out = sum_h y[h] @ wo_heads[h]   * scale,   out: (M, H)
# ----------------------------------------------------------------------------
def _out_projection(y, wo_heads, scale, compute_dtype):
    NH, M, D = y.shape
    H = wo_heads.shape[-1]
    TM = _pick_tile(M, 256)
    TN = _pick_tile(H, 256)
    grid = (M // TM, H // TN, NH)

    def kernel(scale_ref, y_ref, w_ref, o_ref, acc_ref):
        h = pl.program_id(2)

        @pl.when(h == 0)
        def _():
            acc_ref[...] = jnp.zeros_like(acc_ref)

        acc_ref[...] += jnp.dot(
            y_ref[...].astype(compute_dtype),
            w_ref[...],
            preferred_element_type=jnp.float32,
        )

        @pl.when(h == pl.num_programs(2) - 1)
        def _():
            o_ref[...] = (acc_ref[...] * scale_ref[0]).astype(o_ref.dtype)

    return pl.pallas_call(
        kernel,
        out_shape=jax.ShapeDtypeStruct((M, H), jnp.float32),
        grid=grid,
        in_specs=[
            pl.BlockSpec(memory_space=pltpu.MemorySpace.SMEM),
            pl.BlockSpec((None, TM, D), lambda i, j, h: (h, i, 0)),
            pl.BlockSpec((None, D, TN), lambda i, j, h: (h, 0, j)),
        ],
        out_specs=pl.BlockSpec((TM, TN), lambda i, j, h: (i, j)),
        scratch_shapes=[pltpu.VMEM((TM, TN), jnp.float32)],
        compiler_params=pltpu.CompilerParams(
            dimension_semantics=("parallel", "parallel", "arbitrary"),
            vmem_limit_bytes=_VMEM_LIMIT,
        ),
    )(scale, y, wo_heads)


# ----------------------------------------------------------------------------
# LlamaAttention forward
# ----------------------------------------------------------------------------
def llama_attention(x, rotary, params, num_heads, compute_dtype=jnp.float32):
    B, S, H = x.shape
    NH = num_heads
    D = H // NH
    assert NH * D == H and D % 2 == 0
    M = B * S
    x2d = x.reshape(M, H)

    # --- parameter prep (plain JAX glue, once per call) ---
    wq, sq = _quantize(params["wq"])
    wk, sk = _quantize(params["wk"])
    wv, sv = _quantize(params["wv"])
    wo, so = _quantize(params["wo"])

    # Fused ternary QKV weight, head-major: (3*NH, H_in, D).
    w_all = jnp.concatenate([wq, wk, wv], axis=0)              # (3H, H)
    w_heads = w_all.reshape(3 * NH, D, H).transpose(0, 2, 1)   # (3NH, H, D)
    w_heads = w_heads.astype(compute_dtype)                    # exact for {-1,0,1}
    scales = jnp.concatenate(
        [jnp.broadcast_to(s, (NH,)) for s in (sq, sk, sv)]).astype(jnp.float32)
    flags = jnp.array([1] * (2 * NH) + [0] * NH, dtype=jnp.int32)  # RoPE on q/k only

    # Output projection weight, head-major on the contraction axis: (NH, D, H).
    wo_heads = wo.T.reshape(NH, D, H).astype(compute_dtype)
    so_arr = jnp.reshape(so, (1,)).astype(jnp.float32)

    # Rotary: fold rotate_half's sign into sin, tile over batch -> (M, D).
    sign = jnp.concatenate(
        [-jnp.ones((D // 2,), jnp.float32), jnp.ones((D // 2,), jnp.float32)])
    sin_m = jnp.tile(rotary[0].astype(jnp.float32) * sign, (B, 1))
    cos_m = jnp.tile(rotary[1].astype(jnp.float32), (B, 1))

    qkv = _qkv_projection(x2d, w_heads, scales, flags, sin_m, cos_m, compute_dtype)
    y = _flash_attention(qkv, B, S, NH, D, compute_dtype)
    out2d = _out_projection(y, wo_heads, so_arr, compute_dtype)
    return out2d.reshape(B, S, H)


# ----------------------------------------------------------------------------
# Pure-JAX reference for verification
# ----------------------------------------------------------------------------
def _bitlinear_ref(x, w):
    scale = jnp.abs(w).mean() + EPS
    wq = jnp.clip(jnp.round(w / scale), -1.0, 1.0)
    return x @ wq.T * scale


def _ref_forward(x, rotary, params, num_heads):
    B, S, H = x.shape
    D = H // num_heads
    q = _bitlinear_ref(x, params["wq"]).reshape(B, S, num_heads, D)
    k = _bitlinear_ref(x, params["wk"]).reshape(B, S, num_heads, D)
    v = _bitlinear_ref(x, params["wv"]).reshape(B, S, num_heads, D)
    sin = rotary[0][None, :, None, :]
    cos = rotary[1][None, :, None, :]

    def rot_half(t):
        return jnp.concatenate((-t[..., D // 2:], t[..., : D // 2]), axis=-1)

    q = q * cos + rot_half(q) * sin
    k = k * cos + rot_half(k) * sin
    q, k, v = (jnp.transpose(t, (0, 2, 1, 3)) for t in (q, k, v))
    s = jnp.einsum("bhqd,bhkd->bhqk", q, k) / math.sqrt(D)
    mask = jnp.tril(jnp.ones((S, S), dtype=bool))
    s = jnp.where(mask, s, -jnp.inf)
    p = jax.nn.softmax(s, axis=-1)
    y = jnp.einsum("bhqk,bhkd->bhqd", p, v)
    y = jnp.transpose(y, (0, 2, 1, 3)).reshape(B, S, H)
    return _bitlinear_ref(y, params["wo"])


if __name__ == "__main__":
    B, S, H, NH = 2, 8, 32, 4
    D = H // NH

    key = jax.random.PRNGKey(0)
    kx, kq, kk_, kv_, ko = jax.random.split(key, 5)
    x = jax.random.normal(kx, (B, S, H), dtype=jnp.float32)
    params = {
        "wq": 0.05 * jax.random.normal(kq, (H, H), dtype=jnp.float32),
        "wk": 0.05 * jax.random.normal(kk_, (H, H), dtype=jnp.float32),
        "wv": 0.05 * jax.random.normal(kv_, (H, H), dtype=jnp.float32),
        "wo": 0.05 * jax.random.normal(ko, (H, H), dtype=jnp.float32),
    }

    # Standard RoPE table -> rotary[0]=sin, rotary[1]=cos, shape (2, S, D)
    inv_freq = 1.0 / (10000.0 ** (jnp.arange(0, D, 2, dtype=jnp.float32) / D))
    freqs = jnp.outer(jnp.arange(S, dtype=jnp.float32), inv_freq)   # (S, D/2)
    emb = jnp.concatenate([freqs, freqs], axis=-1)                  # (S, D)
    rotary = jnp.stack([jnp.sin(emb), jnp.cos(emb)], axis=0)        # (2, S, D)

    ref = _ref_forward(x, rotary, params, NH)

    # f32 path: tight correctness check against the pure-JAX reference.
    out = jax.block_until_ready(
        llama_attention(x, rotary, params, NH, compute_dtype=jnp.float32))
    assert out.shape == (B, S, H)
    assert jnp.allclose(out, ref, rtol=2e-5, atol=2e-5), (
        float(jnp.max(jnp.abs(out - ref))))

    # bf16 MXU path (f32 accumulation/softmax): loose sanity check.
    out_bf16 = jax.block_until_ready(
        llama_attention(x, rotary, params, NH, compute_dtype=jnp.bfloat16))
    assert jnp.allclose(out_bf16, ref, rtol=1e-1, atol=1e-1), (
        float(jnp.max(jnp.abs(out_bf16 - ref))))

    print("KERNEL_OK")
</pallas_src>

<mosaic_0001>
module attributes {stable_mosaic.version = 11 : i64} {
  func.func @kernel(%arg0: i32, %arg1: i32, %arg2: i32, %arg3: memref<12xf32, #tpu.memory_space<smem>>, %arg4: memref<12xi32, #tpu.memory_space<smem>>, %arg5: memref<16x32xf32, #tpu.memory_space<vmem>>, %arg6: memref<1x32x8xf32, #tpu.memory_space<vmem>>, %arg7: memref<16x8xf32, #tpu.memory_space<vmem>>, %arg8: memref<16x8xf32, #tpu.memory_space<vmem>>, %arg9: memref<1x16x8xf32, #tpu.memory_space<vmem>>, %arg10: memref<16x8xf32, #tpu.memory_space<vmem>>) attributes {dimension_semantics = [#tpu.dimension_semantics<parallel>, #tpu.dimension_semantics<parallel>, #tpu.dimension_semantics<arbitrary>], iteration_bounds = array<i64: 1, 12, 1>, scalar_prefetch = 0 : i64, scratch_operands = 1 : i64, tpu.core_type = #tpu.core_type<tc>, window_params = [{transform_indices = @transform_0, window_bounds = array<i64: 12>}, {transform_indices = @transform_1, window_bounds = array<i64: 12>}, {transform_indices = @transform_2, window_bounds = array<i64: 16, 32>}, {transform_indices = @transform_3, window_bounds = array<i64: 1, 32, 8>}, {transform_indices = @transform_4, window_bounds = array<i64: 16, 8>}, {transform_indices = @transform_5, window_bounds = array<i64: 16, 8>}, {transform_indices = @transform_6, window_bounds = array<i64: 1, 16, 8>}]} {
    %c0_i32 = arith.constant 0 : i32
    %0 = arith.cmpi eq, %arg2, %c0_i32 : i32
    %1 = arith.extui %0 : i1 to i32
    %c0_i32_0 = arith.constant 0 : i32
    %2 = arith.cmpi ne, %1, %c0_i32_0 : i32
    scf.if %2 {
      %cst_13 = arith.constant 0.000000e+00 : f32
      %21 = vector.broadcast %cst_13 : f32 to vector<16x8xf32>
      %c0_14 = arith.constant 0 : index
      %c0_15 = arith.constant 0 : index
      %22 = vector.load %arg10[%c0_14, %c0_15] : memref<16x8xf32, #tpu.memory_space<vmem>>, vector<16x8xf32>
      tpu.vector_store %arg10[%c0_14, %c0_15], %21 {strides = array<i32>} : memref<16x8xf32, #tpu.memory_space<vmem>>, vector<16x8xf32>,
    } else {
    }
    %c0 = arith.constant 0 : index
    %c0_1 = arith.constant 0 : index
    %3 = vector.load %arg10[%c0, %c0_1] : memref<16x8xf32, #tpu.memory_space<vmem>>, vector<16x8xf32>
    %c0_2 = arith.constant 0 : index
    %c0_3 = arith.constant 0 : index
    %4 = vector.load %arg5[%c0_2, %c0_3] : memref<16x32xf32, #tpu.memory_space<vmem>>, vector<16x32xf32>
    %c0_4 = arith.constant 0 : index
    %c0_5 = arith.constant 0 : index
    %c0_6 = arith.constant 0 : index
    %5 = vector.load %arg6[%c0_4, %c0_5, %c0_6] : memref<1x32x8xf32, #tpu.memory_space<vmem>>, vector<1x32x8xf32>
    %6 = vector.shape_cast %5 : vector<1x32x8xf32> to vector<32x8xf32>
    %cst = arith.constant dense<0.000000e+00> : vector<16x8xf32>
    %7 = tpu.matmul %4, %6, %cst {dimension_numbers = #tpu.dot_dimension_numbers<[1], [0], [0], [1], [0, 0, 1, 1], [], []>} : vector<16x32xf32>, vector<32x8xf32>, vector<16x8xf32> -> vector<16x8xf32>
    %8 = arith.addf %3, %7 : vector<16x8xf32>
    %c0_7 = arith.constant 0 : index
    %c0_8 = arith.constant 0 : index
    %9 = vector.load %arg10[%c0_7, %c0_8] : memref<16x8xf32, #tpu.memory_space<vmem>>, vector<16x8xf32>
    tpu.vector_store %arg10[%c0_7, %c0_8], %8 {strides = array<i32>} : memref<16x8xf32, #tpu.memory_space<vmem>>, vector<16x8xf32>,
    %c0_i32_9 = arith.constant 0 : i32
    %10 = arith.cmpi eq, %arg2, %c0_i32_9 : i32
    %11 = arith.index_cast %arg1 : i32 to index
    %12 = memref.load %arg4[%11] : memref<12xi32, #tpu.memory_space<smem>>
    %c0_i32_10 = arith.constant 0 : i32
    %13 = arith.cmpi ne, %12, %c0_i32_10 : i32
    %true = arith.constant true
    %14 = arith.xori %13, %true : i1
    %15 = arith.andi %10, %14 : i1
    %16 = arith.extui %15 : i1 to i32
    %c0_i32_11 = arith.constant 0 : i32
    %17 = arith.cmpi ne, %16, %c0_i32_11 : i32
    scf.if %17 {
      %c0_13 = arith.constant 0 : index
      %c0_14 = arith.constant 0 : index
      %21 = vector.load %arg10[%c0_13, %c0_14] : memref<16x8xf32, #tpu.memory_space<vmem>>, vector<16x8xf32>
      %22 = arith.index_cast %arg1 : i32 to index
      %23 = memref.load %arg3[%22] : memref<12xf32, #tpu.memory_space<smem>>
      %24 = vector.broadcast %23 : f32 to vector<16x8xf32>
      %25 = arith.mulf %21, %24 : vector<16x8xf32>
      %c0_15 = arith.constant 0 : index
      %c0_16 = arith.constant 0 : index
      %c0_17 = arith.constant 0 : index
      %26 = vector.load %arg9[%c0_15, %c0_16, %c0_17] : memref<1x16x8xf32, #tpu.memory_space<vmem>>, vector<1x16x8xf32>
      %27 = vector.shape_cast %26 : vector<1x16x8xf32> to vector<16x8xf32>
      %28 = vector.shape_cast %25 : vector<16x8xf32> to vector<1x16x8xf32>
      tpu.vector_store %arg9[%c0_15, %c0_16, %c0_17], %28 {strides = array<i32>} : memref<1x16x8xf32, #tpu.memory_space<vmem>>, vector<1x16x8xf32>,
    } else {
    }
    %18 = arith.andi %10, %13 : i1
    %19 = arith.extui %18 : i1 to i32
    %c0_i32_12 = arith.constant 0 : i32
    %20 = arith.cmpi ne, %19, %c0_i32_12 : i32
    scf.if %20 {
      %c0_13 = arith.constant 0 : index
      %c0_14 = arith.constant 0 : index
      %21 = vector.load %arg10[%c0_13, %c0_14] : memref<16x8xf32, #tpu.memory_space<vmem>>, vector<16x8xf32>
      %22 = arith.index_cast %arg1 : i32 to index
      %23 = memref.load %arg3[%22] : memref<12xf32, #tpu.memory_space<smem>>
      %24 = vector.broadcast %23 : f32 to vector<16x8xf32>
      %25 = arith.mulf %21, %24 : vector<16x8xf32>
      %26 = vector.extract_strided_slice %25 {offsets = [0, 4], sizes = [16, 4], strides = [1, 1]} : vector<16x8xf32> to vector<16x4xf32>
      %27 = vector.extract_strided_slice %25 {offsets = [0, 0], sizes = [16, 4], strides = [1, 1]} : vector<16x8xf32> to vector<16x4xf32>
      %28 = tpu.concatenate %26, %27 in 1 : vector<16x4xf32>, vector<16x4xf32> -> vector<16x8xf32>
      %c0_15 = arith.constant 0 : index
      %c0_16 = arith.constant 0 : index
      %29 = vector.load %arg8[%c0_15, %c0_16] : memref<16x8xf32, #tpu.memory_space<vmem>>, vector<16x8xf32>
      %30 = arith.mulf %25, %29 : vector<16x8xf32>
      %c0_17 = arith.constant 0 : index
      %c0_18 = arith.constant 0 : index
      %31 = vector.load %arg7[%c0_17, %c0_18] : memref<16x8xf32, #tpu.memory_space<vmem>>, vector<16x8xf32>
      %32 = arith.mulf %28, %31 : vector<16x8xf32>
      %33 = arith.addf %30, %32 : vector<16x8xf32>
      %c0_19 = arith.constant 0 : index
      %c0_20 = arith.constant 0 : index
      %c0_21 = arith.constant 0 : index
      %34 = vector.load %arg9[%c0_19, %c0_20, %c0_21] : memref<1x16x8xf32, #tpu.memory_space<vmem>>, vector<1x16x8xf32>
      %35 = vector.shape_cast %34 : vector<1x16x8xf32> to vector<16x8xf32>
      %36 = vector.shape_cast %33 : vector<16x8xf32> to vector<1x16x8xf32>
      tpu.vector_store %arg9[%c0_19, %c0_20, %c0_21], %36 {strides = array<i32>} : memref<1x16x8xf32, #tpu.memory_space<vmem>>, vector<1x16x8xf32>,
    } else {
    }
    return
  }
  func.func @transform_0(%arg0: i32, %arg1: i32, %arg2: i32) -> i32 {
    %c0_i32 = arith.constant 0 : i32
    %c0_i32_0 = arith.constant 0 : i32
    return %c0_i32 : i32
  }
  func.func @transform_1(%arg0: i32, %arg1: i32, %arg2: i32) -> i32 {
    %c0_i32 = arith.constant 0 : i32
    %c0_i32_0 = arith.constant 0 : i32
    return %c0_i32 : i32
  }
  func.func @transform_2(%arg0: i32, %arg1: i32, %arg2: i32) -> (i32, i32) {
    %c0_i32 = arith.constant 0 : i32
    return %arg0, %arg2 : i32, i32
  }
  func.func @transform_3(%arg0: i32, %arg1: i32, %arg2: i32) -> (i32, i32, i32) {
    %c0_i32 = arith.constant 0 : i32
    %c0_i32_0 = arith.constant 0 : i32
    return %arg1, %arg2, %c0_i32 : i32, i32, i32
  }
  func.func @transform_4(%arg0: i32, %arg1: i32, %arg2: i32) -> (i32, i32) {
    %c0_i32 = arith.constant 0 : i32
    %c0_i32_0 = arith.constant 0 : i32
    return %arg0, %c0_i32 : i32, i32
  }
  func.func @transform_5(%arg0: i32, %arg1: i32, %arg2: i32) -> (i32, i32) {
    %c0_i32 = arith.constant 0 : i32
    %c0_i32_0 = arith.constant 0 : i32
    return %arg0, %c0_i32 : i32, i32
  }
  func.func @transform_6(%arg0: i32, %arg1: i32, %arg2: i32) -> (i32, i32, i32) {
    %c0_i32 = arith.constant 0 : i32
    %c0_i32_0 = arith.constant 0 : i32
    return %arg1, %arg0, %c0_i32 : i32, i32, i32
  }
}

</mosaic_0001>

<bundles_post_ra>
// kernel: tpu_custom_call.1
= control target key start
LH: loop header
LB: loop body
LE: loop exit
PB: predicated region body
PF: predicated region fallthrough
CT: control target
= control target key end

     0   :  { %11 = vsyncpa [#allocation4], 0  ;;  %s1033_s0 = inlined_call_operand.vmem [shape: f32[12], index: 0, kind: input, shape index: {}]   ;;  %s1034_s1 = inlined_call_operand.vmem [shape: s32[12], index: 1, kind: input, shape index: {}]   ;;  %s1035_s2 = inlined_call_operand.vmem [shape: f32[16,32], index: 2, kind: input, shape index: {}]   ;;  %s1036_s3 = inlined_call_operand.vmem [shape: f32[12,32,8], index: 3, kind: input, shape index: {}]   ;;  %s1037_s4 = inlined_call_operand.vmem [shape: f32[16,8], index: 4, kind: input, shape index: {}]   ;;  %s1038_s5 = inlined_call_operand.vmem [shape: f32[16,8], index: 5, kind: input, shape index: {}]   ;;  %s1039_s6 = inlined_call_operand.vmem [shape: f32[12,16,8], index: 6, kind: output, shape index: {}]  }
   0x1   :  { %12 = vsyncpa [#allocation6], 0  ;;  %s919_s21 = smov 0   ;;  %s921_s22 = smov 0  }
   0x2   :  { %s923_s23 = smov 0  }
   0x3 LB: > { %s718_s24 = sadd.s32 4294967295, %s877_s23   ;;  %s33_s25 = sadd.s32 1, %s873_s22  ;;  %s877_s23 = sphi %s923_s23, %s18_s23   ;;  %s873_s22 = sphi %s921_s22, %s1049_s22   ;;  %s869_s21 = sphi %s919_s21, %s1048_s21  }
   0x4   : > { %p35_p0 = scmp.ge.s32.totalorder %s33_s25, 12  ;;  %p720_p1 = scmp.ge.s32.totalorder %s877_s23, 1 }
   0x5   : > { %p220_p2 = scmp.lt.s32.totalorder %s877_s23, 13  ;;  %p944_p4 = scmp.eq.s32.totalorder %s718_s24, 0 }
   0x6   : > { %s1051_s25 = smov (%p35_p0, %s33_s25), 0  ;;  %s233_s30 = sshll.u32 %s1033_s0, 4  ;;  %s234_s30 = int_to_ptr.vmem [resolvable:$true] %s233_s30 }
   0x7   : > { %p940_p3 = pnand %p720_p1, %p220_p2  ;;  %s244_s9 = sshll.u32 %s1034_s1, 4  ;;  %s245_s9 = int_to_ptr.vmem [resolvable:$true] %s244_s9 }
   0x8   : > { %s1044_s27 = scalar_select %p944_p4, 1, 0 }
   0x9   : > { %s1043_s26 = scalar_select %p940_p3, 1, 0 }
   0xa   : > { %p777_p5 = pneg %p940_p3  ;;  %s817_s11 = scalar_lea.vmem %s234_s30, 16 }
   0xb   : > { %p818_p7 = scmp.ne.s32.totalorder %s234_s30, %s817_s11  ;;  %p825_p11 = scmp.lt.s32.totalorder %s234_s30, %s234_s30 }
   0xc   : > { %p958_p6 = pnand %p944_p4, %p777_p5  ;;  %p826_p12 = scmp.lt.s32.totalorder %s817_s11, %s817_s11 }
   0xe   : > { %p819_p8 = pneg %p958_p6  ;;  %p827_p13 = por %p826_p12, %p825_p11 }
  0x10   : > { %p820_p9 = pnand %p819_p8, %p818_p7 }
  0x12   : > { %p821_p10 = pneg %p820_p9 }
  0x14   : > { %p828_p0 = pnand %p827_p13, %p821_p10 }
  0x16   : > { %831 = shalt.err (!%p828_p0)
}
  0x17   : > { %s879_s12 = smov [#allocation3]   ;;  %s832_s13 = scalar_lea.vmem %s245_s9, 16 }
  0x18   : > { %780 = dma.vmem_to_smem (!%p958_p6), %s234_s30, 16, %s879_s12, [#allocation4]  }
  0x19   : > { %p833_p1 = scmp.ne.s32.totalorder %s245_s9, %s832_s13  ;;  %p840_p4 = scmp.lt.s32.totalorder %s245_s9, %s245_s9 }
  0x1a   : > { %p841_p3 = scmp.lt.s32.totalorder %s832_s13, %s832_s13 }
  0x1b   : > { %p835_p2 = pnand %p833_p1, %p819_p8 }
  0x1c   : > { %p842_p7 = por %p841_p3, %p840_p4 }
  0x1d   : > { %p836_p5 = pneg %p835_p2 }
  0x1f   : > { %p843_p9 = pnand %p842_p7, %p836_p5 }
  0x21   : > { %846 = shalt.err (!%p843_p9)
}
  0x22   : > { %s880_s14 = smov [#allocation5]   ;;  %p1046_p10 = scmp.ne.s32.totalorder %s1043_s26, 0 }
  0x23   : > { %783 = dma.vmem_to_smem (!%p958_p6), %s245_s9, 16, %s880_s14, [#allocation6]  }
  0x24   : > { %300 = sbr.rel (%p1046_p10) target bundleno = 425 (0x1a9), region = 44  ;;  %p1047_p11 = scmp.ne.s32.totalorder (!%p1046_p10), %s1044_s27, 0 }
  0x2b   : > { %860 = dma.done.wait (%p1047_p11), [#allocation4], 16  }
  0x2c   : > { %862 = vsyncadd (%p1047_p11), [#allocation4], 4294967280 }
  0x2d   : > { %864 = dma.done.wait (%p1047_p11), [#allocation6], 16  }
  0x2e   : > { %866 = vsyncadd (%p1047_p11), [#allocation6], 4294967280 }
  0x2f   : > { %310 = sfence }
  0x30   : > { %p371_p3 = scmp.lt.s32.totalorder %s869_s21, 11  ;;  %v411_v0 = vld [vmem:[%s1035_s2] sm:$0xff]  ;;  %vm417_vm0 = vcmask 261120   ;;  %vm406_vm1 = vcmask 64512   ;;  %v881_v1 = vmov 0.0   ;;  %v412_v8 = vld [vmem:[%s1035_s2 + $0x8] sm:$0xff] }
  0x31   : > { %758 = vmatprep.mubr.msk.f32.mxu0 %vm417_vm0, %v411_v0  ;;  %408 = vst.msk [vmem:[#allocation2 + $0x8] sm:$0xff] %vm406_vm1, %v881_v1  ;;  %407 = vst.msk [vmem:[#allocation2] sm:$0xff] %vm406_vm1, %v881_v1  ;;  %s504_s8 = sld [smem:[#allocation5 + %s869_s21]] }
  0x32   : > { %s372_s17 = scalar_select %p371_p3, %s869_s21, 11 }
  0x34   : > { %s740_s18 = sshll.u32 %s372_s17, 5  ;;  %s741_s19 = sshll.u32 %s372_s17, 4 }
  0x35   : > { %s378_s26 = scalar_lea.vmem %s1036_s3, %s740_s18  ;;  %s992_s29 = scalar_lea.vmem %s1039_s6, %s741_s19 }
  0x36   : > { %v413_v2 = vld [vmem:[%s378_s26] sm:$0xff]  ;;  %v414_v3 = vld [vmem:[%s378_s26 + $0x8] sm:$0xff]  ;;  %v415_v4 = vld [vmem:[%s378_s26 + $0x10] sm:$0xff] }
  0x37   : > { %v761_v5 = vpack.c.bf16 %v414_v3, %v413_v2  ;;  %v416_v6 = vld [vmem:[%s378_s26 + $0x18] sm:$0xff]  ;;  %p505_p4 = scmp.ne.s32.totalorder %s504_s8, 0  ;;  %p506_p6 = scmp.eq.s32.totalorder %s504_s8, 0 }
  0x38   : > { %v765_v7 = vpack.c.bf16 %v416_v6, %v415_v4  ;;  %v410_v9 = vld [vmem:[#allocation2 + $0x8] sm:$0xff]  ;;  %v409_v10 = vld [vmem:[#allocation2] sm:$0xff]  ;;  %s513_s9 = sld [smem:[#allocation3 + %s869_s21]] (%p506_p6) }
  0x39   : > { %762 = vmatprep.subr.bf16.mxu0 %v761_v5 }
  0x3a   : > { %764 = vmatpush3.bf16.msra.mxu0 %v761_v5 }
  0x3b   : > { %766 = vmatprep.subr.bf16.mxu0 %v765_v7 }
  0x3e   : > { %768 = vmatpush3.bf16.msra.mxu0 %v765_v7  ;;  %v514_v17 = vstv (%p506_p6), %s513_s9 }
  0x41   : > { %759 = vmatmul.mubr.msk.f32.vlgmr.msra.gmra.mrb[0].mxu0 %vm417_vm0, %v412_v8 }
 0x112   : > { %510 = sbr.rel (!%p506_p6) target bundleno = 291 (0x123), region = 60 }
 0x114   : > { %v760_v11 = vpop.f32.mrb[0].mxu0 }
 0x115   : > { %v500_v12 = vadd.f32 %v760_v11, %v410_v9  ;;  %v490_v13 = vpop.f32.mrb[1].mxu0 }
 0x116   : > { %v499_v14 = vadd.f32 %v490_v13, %v409_v10 }
 0x117   : > { %503 = vst.msk [vmem:[#allocation2 + $0x8] sm:$0xff] %vm406_vm1, %v500_v12 }
 0x118   : > { %502 = vst.msk [vmem:[#allocation2] sm:$0xff] %vm406_vm1, %v499_v14 }
 0x11e   : > { %v512_v16 = vld [vmem:[#allocation2 + $0x8] sm:$0xff] }
 0x11f   : > { %v511_v15 = vld [vmem:[#allocation2] sm:$0xff]  ;;  %v516_v19 = vmul.f32 %v514_v17, %v512_v16 }
 0x120   : > { %v515_v18 = vmul.f32 %v514_v17, %v511_v15 }
 0x121   : > { %518 = vst.msk [vmem:[%s992_s29 + $0x8] sm:$0xff] %vm406_vm1, %v516_v19 }
 0x122   : > { %517 = vst.msk [vmem:[%s992_s29] sm:$0xff] %vm406_vm1, %v515_v18 }
 0x123 PF: > { %522 = sbr.rel (!%p505_p4) target bundleno = 425 (0x1a9), region = 64  ;;  %s525_s10 = sld [smem:[#allocation3 + %s869_s21]] (%p505_p4)  ;;  %v546_v25 = vld [vmem:[%s1038_s5] sm:$0xff] (%p505_p4)  ;;  %vm543_vm2 = vcmask (%p505_p4), 31744   ;;  %v547_v31 = vld [vmem:[%s1038_s5 + $0x8] sm:$0xff] (%p505_p4) }
 0x124   : > { %s882_s11 = smov (%p505_p4), 4   ;;  %s883_s12 = smov (%p505_p4), 124   ;;  %v550_v26 = vld [vmem:[%s1037_s4] sm:$0xff] (%p505_p4)  ;;  %v551_v33 = vld [vmem:[%s1037_s4 + $0x8] sm:$0xff] (%p505_p4) }
 0x128   : > { %v524_v22 = vld [vmem:[#allocation2 + $0x8] sm:$0xff] (%p505_p4) }
 0x129   : > { %v523_v20 = vld [vmem:[#allocation2] sm:$0xff] (%p505_p4)  ;;  %v526_v21 = vstv (%p505_p4), %s525_s10 }
 0x12a   : > { %v527_v23 = vmul.f32 %v526_v21, %v523_v20  ;;  %v528_v24 = vmul.f32 %v526_v21, %v524_v22 }
 0x12c   : > { %537 = vrot.lane.b32.xlu1 %v527_v23, %s882_s11  ;;  %531 = vrot.lane.b32.xlu0 %v527_v23, %s883_s12  ;;  %v548_v29 = vmul.f32 %v546_v25, %v527_v23  ;;  %v549_v36 = vmul.f32 %v547_v31, %v528_v24 }
 0x130   : > { %539 = vrot.lane.b32.xlu1 %v528_v24, %s882_s11  ;;  %533 = vrot.lane.b32.xlu0 %v528_v24, %s883_s12 }
 0x19e   : > { %v538_v27 = vpop.permute.xlu1 %537  ;;  %v532_v28 = vpop.permute.xlu0 %531 }
 0x19f   : > { %v544_v30 = vsel %vm543_vm2, %v532_v28, %v538_v27 }
 0x1a0   : > { %v552_v32 = vmul.f32 %v550_v26, %v544_v30 }
 0x1a2   : > { %v554_v34 = vadd.f32 %v552_v32, %v548_v29  ;;  %v540_v35 = vpop.permute.xlu1 %539  ;;  %v534_v37 = vpop.permute.xlu0 %533 }
 0x1a3   : > { %v545_v38 = vsel %vm543_vm2, %v534_v37, %v540_v35 }
 0x1a4   : > { %556 = vst.msk [vmem:[%s992_s29] sm:$0xff] %vm406_vm1, %v554_v34  ;;  %v553_v39 = vmul.f32 %v551_v33, %v545_v38 }
 0x1a6   : > { %v555_v40 = vadd.f32 %v553_v39, %v549_v36 }
 0x1a8   : > { %557 = vst.msk [vmem:[%s992_s29 + $0x8] sm:$0xff] %vm406_vm1, %v555_v40 }
 0x1a9 PF: > { %s18_s23 = sadd.s32 1, %s877_s23   ;;  %s1048_s21 = smov %s873_s22 }
 0x1aa   : > { %p15_p8 = scmp.ge.s32.totalorder %s18_s23, 14   ;;  %s1049_s22 = smov %s1051_s25 }
 0x1ac   :  { %17 = sbr.rel (!%p15_p8) target bundleno = 3 (0x3), region = 104 }
 0x1b3   :  { %588 = vsyncpa [#allocation4], 1 }
 0x1b4   :  { %590 = vsyncpa [#allocation4 + $0x1], 1 }
 0x1b5   :  { %591 = vsyncpa [#allocation6], 1 }

</bundles_post_ra>
